<compile_context>
chip_gen: v7x
topology: tpu7x:2x2x1
jax: 0.10.0
libtpu: 0.0.40
codegen_flags: <defaults>
</compile_context>

<pallas_src>
import jax
import jax.numpy as jnp
from jax import lax
from jax.experimental import pallas as pl
from jax.experimental.pallas import tpu as pltpu


_LANE = 128
_RESIDENT_B_BUDGET = 32 * 1024 * 1024   # double-buffered block budget for fast path
_TILED_BUDGET = 24 * 1024 * 1024        # double-buffered block budget for fallback
_VMEM_CAP = 48 * 1024 * 1024            # never request v7x's full 64 MiB


def _corr_kernel(a_ref, b_ref, out_ref):
    # a_ref:  (c, TM) channel-first slice of A (lanes = output-row indices k)
    # b_ref:  (c, P)  channel-first slice of B (lanes = output-col indices p)
    # out_ref: (TM, P) with out[k, p] = sum_c a[c, k] * b[c, p]
    # Contraction over the sublane (c) axis keeps c off the lane axis, which is
    # the right layout for small c (c on lanes would waste 124/128 lanes).
    # TODO(synk): for c >= 128, dump MLIR and, if Mosaic inserts a vxpose for
    # this LHS, feed A pre-laid-out as (hw, c) so the matmul is (TM,c)x(c,P).
    out_ref[...] = lax.dot_general(
        a_ref[...],
        b_ref[...],
        dimension_numbers=(((0,), (0,)), ((), ())),   # contract over channel dim
        preferred_element_type=jnp.float32,
    ).astype(out_ref.dtype)


def _round_up(x, m):
    return ((x + m - 1) // m) * m


def _largest_divisor_tile(extent, candidates):
    # `extent` is always a multiple of 128, so 128 always divides it.
    for t in candidates:
        if extent % t == 0:
            return t
    return _LANE


def feature_correlation(feature_A, feature_B, *,
                        resident_b_budget=_RESIDENT_B_BUDGET):
    """Pallas implementation of FeatureCorrelation.forward (inputs NCHW)."""
    b, c, h, w = feature_A.shape
    hw = h * w
    hw_pad = _round_up(hw, _LANE)
    dsize = jnp.dtype(feature_A.dtype).itemsize
    out_dtype = feature_A.dtype

    # Channel-first operands (contraction dim c stays off the lane axis):
    #   a_mat[b, c, k] with k = wi*h + hi  (torch: transpose(2,3) then flatten)
    #   b_mat[b, c, p] with p = i*w + j    (plain spatial flatten; free reshape)
    # TODO(synk): for large c, fold this A transpose into the kernel (per-batch
    # resident (c, h, w) block + in-VMEM transpose) to save one HBM pass over A.
    a_mat = jnp.transpose(feature_A, (0, 1, 3, 2)).reshape(b, c, hw)
    b_mat = feature_B.reshape(b, c, hw)
    if hw_pad != hw:
        pad = ((0, 0), (0, 0), (0, hw_pad - hw))
        a_mat = jnp.pad(a_mat, pad)
        b_mat = jnp.pad(b_mat, pad)

    # ---------------- tile selection ----------------
    # TM is the lane axis of the A block, so it must be a multiple of 128.
    tm = _largest_divisor_tile(hw_pad, (512, 256, 128))
    # v7x megacore: keep >= 2 grid points so both TensorCores get work when the
    # batch dim alone does not split the grid.
    while b * (hw_pad // tm) < 2 and tm > _LANE:
        tm //= 2

    # Full-resident-B fast path if the double-buffered working set fits.
    resident_bytes = 2 * dsize * (tm * hw_pad + c * tm + c * hw_pad)
    use_resident_b = resident_bytes <= resident_b_budget

    if use_resident_b:
        grid = (b, hw_pad // tm)
        in_specs = [
            # A tile changes with ki.
            pl.BlockSpec((pl.Squeezed(), c, tm), lambda bi, ki: (bi, 0, ki)),
            # B index is constant over ki -> DMA'd once per batch, fully resident.
            pl.BlockSpec((pl.Squeezed(), c, hw_pad), lambda bi, ki: (bi, 0, 0)),
        ]
        out_specs = pl.BlockSpec(
            (pl.Squeezed(), tm, hw_pad), lambda bi, ki: (bi, ki, 0)
        )
        dim_sems = ("parallel", "parallel")
        buf_bytes = resident_bytes
        bytes_accessed = dsize * (b * hw_pad * hw_pad + 2 * b * c * hw_pad)
    else:
        # p-tiled fallback for very large hw (B does not fit in VMEM per batch).
        # TODO(synk): add a c (reduction) grid axis if c*TN blocks ever outgrow VMEM.
        tn = _largest_divisor_tile(hw_pad, (1024, 512, 256, 128))

        def _bufs(tm_, tn_):
            return 2 * dsize * (tm_ * tn_ + c * tm_ + c * tn_)

        while _bufs(tm, tn) > _TILED_BUDGET and tm > _LANE:
            tm //= 2
        while _bufs(tm, tn) > _TILED_BUDGET and tn > _LANE:
            tn //= 2
        n_k = hw_pad // tm
        n_p = hw_pad // tn
        grid = (b, n_k, n_p)
        in_specs = [
            # A index is constant across the innermost (pi) axis -> no re-DMA.
            # NOTE: keep pi innermost; reordering silently re-fetches A each step.
            pl.BlockSpec((pl.Squeezed(), c, tm), lambda bi, ki, pi: (bi, 0, ki)),
            # B is streamed per pi (and inherently re-read once per ki tile).
            # TODO(synk): if xprof shows exposed DMA on v7x, add
            # pipeline_mode=pl.Buffered(3) to this spec.
            pl.BlockSpec((pl.Squeezed(), c, tn), lambda bi, ki, pi: (bi, 0, pi)),
        ]
        out_specs = pl.BlockSpec(
            (pl.Squeezed(), tm, tn), lambda bi, ki, pi: (bi, ki, pi)
        )
        dim_sems = ("parallel", "parallel", "parallel")
        buf_bytes = _bufs(tm, tn)
        bytes_accessed = dsize * (
            b * hw_pad * hw_pad + b * c * hw_pad + b * n_k * c * hw_pad
        )

    # Derive the VMEM limit from the real working set (+ headroom for compiler
    # scratch); never request v7x's full 64 MiB physical VMEM.
    vmem_limit = int(min(max(buf_bytes + (12 << 20), 16 << 20), _VMEM_CAP))

    grid_spec = pltpu.PrefetchScalarGridSpec(
        num_scalar_prefetch=0,
        grid=grid,
        in_specs=in_specs,
        out_specs=out_specs,
    )

    out_padded = pl.pallas_call(
        _corr_kernel,
        out_shape=jax.ShapeDtypeStruct((b, hw_pad, hw_pad), out_dtype),
        grid_spec=grid_spec,
        compiler_params=pltpu.CompilerParams(
            dimension_semantics=dim_sems,
            vmem_limit_bytes=vmem_limit,
        ),
        cost_estimate=pl.CostEstimate(
            flops=2 * b * hw_pad * hw_pad * c,
            bytes_accessed=int(bytes_accessed),
            transcendentals=0,
        ),
    )(a_mat, b_mat)                            # (b, hw_pad_k, hw_pad_p) == M^T

    if hw_pad != hw:
        out_padded = out_padded[:, :hw, :hw]
    # out[b, k, i, j] = M[b, i*w + j, k] -> plain reshape, no HBM transpose.
    return out_padded.reshape(b, hw, h, w)


def _reference(feature_A, feature_B):
    """Pure-JAX transcription of the PyTorch forward for verification."""
    b, c, h, w = feature_A.shape
    fa = jnp.transpose(feature_A, (0, 1, 3, 2)).reshape(b, c, h * w)
    fb = jnp.transpose(feature_B.reshape(b, c, h * w), (0, 2, 1))
    fm = jnp.einsum("bpc,bck->bpk", fb, fa)
    ct = fm.reshape(b, h, w, h * w)
    ct = jnp.transpose(ct, (0, 1, 3, 2))   # transpose(2,3)
    ct = jnp.transpose(ct, (0, 2, 1, 3))   # transpose(1,2)
    return ct


def _check(b, c, h, w, key, **kwargs):
    k1, k2 = jax.random.split(key)
    feature_A = jax.random.normal(k1, (b, c, h, w), dtype=jnp.float32)
    feature_B = jax.random.normal(k2, (b, c, h, w), dtype=jnp.float32)

    out = jax.block_until_ready(feature_correlation(feature_A, feature_B, **kwargs))
    ref = jax.block_until_ready(_reference(feature_A, feature_B))

    assert out.shape == (b, h * w, h, w), out.shape
    assert jnp.allclose(out, ref, atol=1e-5, rtol=1e-5), "mismatch vs reference"


if __name__ == "__main__":
    keys = jax.random.split(jax.random.PRNGKey(0), 4)

    # Primary spec-consistent small shape: aligned hw=256, resident-B fast path.
    _check(2, 4, 16, 16, keys[0])
    # Non-square spatial: hw=384 -> TM=128, multi-ki grid (resident-B path).
    _check(2, 4, 16, 24, keys[1])
    # Realistic FeatureCorrelation spatial (15x15): hw=225 padded to 256,
    # exercising the zero-pad + output-slice path.
    _check(2, 4, 15, 15, keys[2])
    # Force the p-tiled fallback path (tiny resident-B budget) to keep it tested.
    _check(2, 4, 16, 24, keys[3], resident_b_budget=0)

    print("KERNEL_OK")
</pallas_src>

<mosaic_0001>
module attributes {stable_mosaic.version = 11 : i64} {
  func.func @_corr_kernel(%arg0: i32, %arg1: i32, %arg2: memref<1x4x256xf32, #tpu.memory_space<vmem>>, %arg3: memref<1x4x256xf32, #tpu.memory_space<vmem>>, %arg4: memref<1x256x256xf32, #tpu.memory_space<vmem>>) attributes {dimension_semantics = [#tpu.dimension_semantics<parallel>, #tpu.dimension_semantics<parallel>], iteration_bounds = array<i64: 2, 1>, scalar_prefetch = 0 : i64, scratch_operands = 0 : i64, tpu.core_type = #tpu.core_type<tc>, window_params = [{transform_indices = @transform_0, window_bounds = array<i64: 1, 4, 256>}, {transform_indices = @transform_1, window_bounds = array<i64: 1, 4, 256>}, {transform_indices = @transform_2, window_bounds = array<i64: 1, 256, 256>}]} {
    %c0 = arith.constant 0 : index
    %c0_0 = arith.constant 0 : index
    %c0_1 = arith.constant 0 : index
    %0 = vector.load %arg2[%c0, %c0_0, %c0_1] : memref<1x4x256xf32, #tpu.memory_space<vmem>>, vector<1x4x256xf32>
    %1 = vector.shape_cast %0 : vector<1x4x256xf32> to vector<4x256xf32>
    %c0_2 = arith.constant 0 : index
    %c0_3 = arith.constant 0 : index
    %c0_4 = arith.constant 0 : index
    %2 = vector.load %arg3[%c0_2, %c0_3, %c0_4] : memref<1x4x256xf32, #tpu.memory_space<vmem>>, vector<1x4x256xf32>
    %3 = vector.shape_cast %2 : vector<1x4x256xf32> to vector<4x256xf32>
    %cst = arith.constant dense<0.000000e+00> : vector<256x256xf32>
    %4 = tpu.matmul %1, %3, %cst {dimension_numbers = #tpu.dot_dimension_numbers<[0], [0], [1], [1], [0, 1, 1, 1], [], []>} : vector<4x256xf32>, vector<4x256xf32>, vector<256x256xf32> -> vector<256x256xf32>
    %c0_5 = arith.constant 0 : index
    %c0_6 = arith.constant 0 : index
    %c0_7 = arith.constant 0 : index
    %5 = vector.load %arg4[%c0_5, %c0_6, %c0_7] : memref<1x256x256xf32, #tpu.memory_space<vmem>>, vector<1x256x256xf32>
    %6 = vector.shape_cast %5 : vector<1x256x256xf32> to vector<256x256xf32>
    %7 = vector.shape_cast %4 : vector<256x256xf32> to vector<1x256x256xf32>
    tpu.vector_store %arg4[%c0_5, %c0_6, %c0_7], %7 {strides = array<i32>} : memref<1x256x256xf32, #tpu.memory_space<vmem>>, vector<1x256x256xf32>,
    return
  }
  func.func @transform_0(%arg0: i32, %arg1: i32) -> (i32, i32, i32) {
    %c0_i32 = arith.constant 0 : i32
    %c0_i32_0 = arith.constant 0 : i32
    return %arg0, %c0_i32, %arg1 : i32, i32, i32
  }
  func.func @transform_1(%arg0: i32, %arg1: i32) -> (i32, i32, i32) {
    %c0_i32 = arith.constant 0 : i32
    %c0_i32_0 = arith.constant 0 : i32
    %c0_i32_1 = arith.constant 0 : i32
    return %arg0, %c0_i32, %c0_i32_0 : i32, i32, i32
  }
  func.func @transform_2(%arg0: i32, %arg1: i32) -> (i32, i32, i32) {
    %c0_i32 = arith.constant 0 : i32
    %c0_i32_0 = arith.constant 0 : i32
    return %arg0, %arg1, %c0_i32 : i32, i32, i32
  }
}

</mosaic_0001>

<bundles_post_ra>
// kernel: tpu_custom_call.1
= control target key start
LH: loop header
LB: loop body
LE: loop exit
PB: predicated region body
PF: predicated region fallthrough
CT: control target
= control target key end

     0   :  { %7 = vsyncpa [#allocation3], 0  ;;  %s1492_s0 = inlined_call_operand.hbm [shape: f32[2,4,256], index: 0, kind: input, shape index: {}]   ;;  %s1493_s1 = inlined_call_operand.hbm [shape: f32[2,4,256], index: 1, kind: input, shape index: {}]   ;;  %s1494_s2 = inlined_call_operand.hbm [shape: f32[2,256,256], index: 2, kind: output, shape index: {}]  }
   0x1   :  { %9 = vsyncpa [#allocation3 + $0x1], 0 }
   0x2   :  { %10 = vsyncpa [#allocation6], 0 }
   0x3   :  { %12 = vsyncpa [#allocation6 + $0x1], 0 }
   0x4   :  { %13 = vsyncpa [#allocation4], 0 }
   0x5   :  { %15 = vsyncpa [#allocation4 + $0x1], 0  ;;  %s1138_s9 = smov 0   ;;  %s1140_s10 = smov 0  }
   0x6   :  { %s1142_s11 = smov 0   ;;  %s1144_s12 = smov 0  }
   0x7   :  { %s1146_s13 = smov 0   ;;  %s1148_s14 = smov 0  }
   0x8 LB: > { %s839_s15 = sadd.s32 4294967295, %s1115_s14   ;;  %s840_s16 = sadd.s32 4294967294, %s1115_s14   ;;  %s1115_s14 = sphi %s1148_s14, %s21_s14   ;;  %s1111_s13 = sphi %s1146_s13, %s1514_s13   ;;  %s1107_s12 = sphi %s1144_s12, %s1513_s12   ;;  %s1103_s11 = sphi %s1142_s11, %s1512_s11   ;;  %s1099_s10 = sphi %s1140_s10, %s1511_s10   ;;  %s1095_s9 = sphi %s1138_s9, %s1510_s9  }
   0x9   : > { %s33_s17 = sadd.s32 1, %s1111_s13  ;;  %s42_s18 = sadd.s32 1, %s1103_s11 }
   0xa   : > { %p35_p0 = scmp.ge.s32.totalorder %s33_s17, 2  ;;  %p49_p1 = scmp.ne.s32.totalorder %s1103_s11, %s1099_s10 }
   0xb   : > { %p50_p2 = scmp.eq.s32.totalorder %s1115_s14, 0  ;;  %p55_p3 = scmp.ne.s32.totalorder %s1099_s10, %s1095_s9 }
   0xc   : > { %s1516_s17 = smov (%p35_p0, %s33_s17), 0  ;;  %p56_p5 = scmp.eq.s32.totalorder %s839_s15, 0 }
   0xd   : > { %p1179_p4 = por %p50_p2, %p49_p1  ;;  %s37_s20 = ssub.s32 %s1111_s13, %s1516_s17 }
   0xe   : > { %p107_p6 = scmp.eq.s32.totalorder %s839_s15, 1  ;;  %p40_p7 = scmp.eq.s32.totalorder %s37_s20, 0 }
   0xf   : > { %p1185_p8 = por %p56_p5, %p55_p3  ;;  %p113_p10 = scmp.eq.s32.totalorder %s840_s16, 1 }
  0x10   : > { %p1189_p9 = por %p107_p6, %p49_p1  ;;  %p914_p13 = scmp.lt.s32.totalorder %s1115_s14, 2 }
  0x11   : > { %s1498_s21 = scalar_select %p1185_p8, 1, 0 }
  0x12   : > { %s1499_s22 = scalar_select %p1189_p9, 1, 0 }
  0x13   : > { %s1194_s23 = scalar_select %p40_p7, %s1103_s11, %s42_s18  }
  0x14   : > { %p1196_p11 = por %p113_p10, %p55_p3  ;;  %s1203_s25 = sand.u32 1, %s1103_s11  }
  0x15   : > { %s843_s26 = sshll.u32 %s1203_s25, 3  ;;  %s892_s27 = sshll.u32 %s1111_s13, 7 }
  0x16   : > { %s1500_s24 = scalar_select %p1196_p11, 1, 0 }
  0x17   : > { %s1212_s30 = scalar_lea.hbm %s1492_s0, %s892_s27  ;;  %s137_s3 = scalar_lea.vmem [#allocation2], %s843_s26 }
  0x18   : > { %s147_s4 = sshll.u32 %s137_s3, 4  ;;  %p1220_p0 = pnand %p914_p13, %p1179_p4  ;;  %s1216_s4 = int_to_ptr.vmem [resolvable:$true] %s147_s4 }
  0x19   : > { %s134_s6 = scalar_lea.sflag [#allocation3], %s1203_s25  ;;  %s969_s7 = scalar_lea.hbm %s1212_s30, 128 }
  0x1a   : > { %p970_p3 = scmp.ne.s32.totalorder %s1212_s30, %s969_s7  ;;  %p971_p5 = pneg %p1220_p0 }
  0x1b   : > { %s974_s16 = scalar_lea.hbm %s1492_s0, 256  ;;  %p975_p4 = scmp.lt.u32.totalorder %s1212_s30, %s1492_s0 }
  0x1c   : > { %p972_p6 = pnand %p971_p5, %p970_p3  ;;  %p976_p10 = scmp.lt.u32.totalorder %s974_s16, %s969_s7 }
  0x1d   : > { %p978_p12 = scmp.lt.u32.totalorder %s969_s7, %s1212_s30 }
  0x1e   : > { %p973_p7 = pneg %p972_p6  ;;  %p977_p13 = por %p976_p10, %p975_p4 }
  0x20   : > { %p979_p1 = por %p978_p12, %p977_p13 }
  0x22   : > { %p980_p2 = pnand %p979_p1, %p973_p7 }
  0x24   : > { %983 = shalt.err (!%p980_p2)
}
  0x25   : > { %s984_s20 = scalar_lea.vmem %s1216_s4, 128  ;;  %s1117_s28 = smov [#allocation2]  }
  0x26   : > { %p985_p3 = scmp.ne.s32.totalorder %s1216_s4, %s984_s20  ;;  %s989_s29 = sshll.u32 %s1117_s28, 4  ;;  %s990_s29 = int_to_ptr.vmem [resolvable:$false] %s989_s29 }
  0x27   : > { %s991_s3 = scalar_lea.vmem %s990_s29, 256  ;;  %p992_p9 = scmp.lt.s32.totalorder %s1216_s4, %s990_s29 }
  0x28   : > { %p987_p6 = pnand %p985_p3, %p971_p5  ;;  %p993_p4 = scmp.lt.s32.totalorder %s991_s3, %s984_s20 }
  0x2a   : > { %p988_p11 = pneg %p987_p6  ;;  %p994_p10 = por %p993_p4, %p992_p9 }
  0x2c   : > { %p995_p12 = pnand %p994_p10, %p988_p11 }
  0x2e   : > { %998 = shalt.err (!%p995_p12)
}
  0x2f   : > { %906 = dma.hbm_to_vmem [thread:$0]  (!%p1220_p0), %s1212_s30, 128, %s1216_s4, %s134_s6  }
  0x30   : > { %p1502_p1 = scmp.lt.s32.totalorder %s1115_s14, 3  ;;  %p1503_p2 = scmp.ge.s32.totalorder %s1115_s14, 1 }
  0x31   : > { %s1265_s16 = scalar_lea.hbm %s1493_s1, %s892_s27  ;;  %s158_s18 = scalar_lea.vmem [#allocation5], %s843_s26 }
  0x32   : > { %p1256_p7 = pnand %p1503_p2, %p1502_p1  ;;  %s166_s19 = sshll.u32 %s158_s18, 4  ;;  %s167_s19 = int_to_ptr.vmem [resolvable:$true] %s166_s19 }
  0x33   : > { %s155_s30 = scalar_lea.sflag [#allocation6], %s1203_s25  ;;  %s999_s4 = scalar_lea.hbm %s1265_s16, 128 }
  0x34   : > { %s1504_s7 = scalar_select %p1256_p7, 1, 0 }
  0x35   : > { %p1000_p9 = scmp.ne.s32.totalorder %s1265_s16, %s999_s4  ;;  %s1004_s27 = scalar_lea.hbm %s1493_s1, 256 }
  0x36   : > { %p1005_p3 = scmp.lt.u32.totalorder %s1265_s16, %s1493_s1  ;;  %p1006_p6 = scmp.lt.u32.totalorder %s1004_s27, %s999_s4 }
  0x37   : > { %p1002_p11 = pnand %p1000_p9, %p971_p5  ;;  %p1008_p10 = scmp.lt.u32.totalorder %s999_s4, %s1265_s16 }
  0x38   : > { %p1007_p4 = por %p1006_p6, %p1005_p3 }
  0x39   : > { %p1003_p13 = pneg %p1002_p11 }
  0x3a   : > { %p1009_p12 = por %p1008_p10, %p1007_p4 }
  0x3c   : > { %p1010_p1 = pnand %p1009_p12, %p1003_p13 }
  0x3e   : > { %1013 = shalt.err (!%p1010_p1)
}
  0x3f   : > { %s1014_s25 = scalar_lea.vmem %s167_s19, 128  ;;  %s1118_s26 = smov [#allocation5]  }
  0x40   : > { %p1015_p2 = scmp.ne.s32.totalorder %s167_s19, %s1014_s25  ;;  %s1019_s3 = sshll.u32 %s1118_s26, 4  ;;  %s1020_s3 = int_to_ptr.vmem [resolvable:$false] %s1019_s3 }
  0x41   : > { %s1021_s8 = scalar_lea.vmem %s1020_s3, 256  ;;  %p1022_p8 = scmp.lt.s32.totalorder %s167_s19, %s1020_s3 }
  0x42   : > { %p1017_p9 = pnand %p1015_p2, %p971_p5  ;;  %p1023_p7 = scmp.lt.s32.totalorder %s1021_s8, %s1014_s25 }
  0x44   : > { %p1018_p11 = pneg %p1017_p9  ;;  %p1024_p3 = por %p1023_p7, %p1022_p8 }
  0x46   : > { %p1025_p6 = pnand %p1024_p3, %p1018_p11 }
  0x48   : > { %1028 = shalt.err (!%p1025_p6)
}
  0x49   : > { %909 = dma.hbm_to_vmem [thread:$0]  (!%p1220_p0), %s1265_s16, 128, %s167_s19, %s155_s30  }
  0x4a   : > { %p1505_p13 = scmp.ne.s32.totalorder %s1504_s7, 0 }
  0x4b   : > { %s1292_s15 = sand.u32 (!%p1505_p13), 1, %s1099_s10   ;;  %p1506_p5 = scmp.ne.s32.totalorder (!%p1505_p13), %s1498_s21, 0 }
  0x4c   : > { %175 = sbr.rel (%p1505_p13) target bundleno = 569 (0x239), region = 28  ;;  %s850_s18 = sshll.u32 (!%p1505_p13), %s1292_s15, 3 }
  0x4d   : > { %s178_s4 = scalar_lea.sflag (!%p1505_p13), [#allocation3], %s1292_s15  ;;  %s181_s6 = scalar_lea.vmem (!%p1505_p13), [#allocation2], %s850_s18 }
  0x53   : > { %1082 = dma.done.wait (%p1506_p5), %s178_s4, 128  }
  0x54   : > { %1084 = vsyncadd (%p1506_p5), %s178_s4, 4294967168  ;;  %s187_s5 = scalar_lea.sflag [#allocation6], %s1292_s15  ;;  %s190_s16 = scalar_lea.vmem [#allocation5], %s850_s18 }
  0x55   : > { %1086 = dma.done.wait (%p1506_p5), %s187_s5, 128  }
  0x56   : > { %1088 = vsyncadd (%p1506_p5), %s187_s5, 4294967168  ;;  %v1119_v0 = vmov 0.0   ;;  %v218_v1 = vld [vmem:[%s181_s6] sm:$0xff]  ;;  %v219_v2 = vld [vmem:[%s190_s16] sm:$0xff]  ;;  %vm386_vm0 = vcmask 1043456   ;;  %vm289_vm1 = vcmask 31744  }
  0x57   : > { %455 = vmatprep.mubr.f32.mxu0 %v1119_v0  ;;  %551 = vmatprep.mubr.f32.mxu1 %v1119_v0  ;;  %v288_v3 = vcombine.high %v219_v2, %v219_v2  ;;  %v221_v4 = vcombine.high %v218_v1, %v218_v1  ;;  %s852_s21 = sshll.u32 %s1292_s15, 9  ;;  %s894_s19 = sshll.u32 %s1107_s12, 13 }
  0x58   : > { %223 = vxpose.xlu0.b32.start.end [1/1] (short) %v218_v1, 128  ;;  %s1370_s7 = scalar_lea.vmem [#allocation7], %s852_s21  ;;  %s1439_s28 = scalar_lea.hbm %s1494_s2, %s894_s19 }
  0x59   : > { %853 = vmatprep.subr.msk.mxu0 %vm386_vm0, %v288_v3  ;;  %895 = vmatprep.subr.msk.mxu1 %vm386_vm0, %v288_v3  ;;  %s729_s30 = sshll.u32 %s1370_s7, 4  ;;  %s713_s29 = scalar_lea.sflag [#allocation4], %s1292_s15  ;;  %s1441_s30 = int_to_ptr.vmem [resolvable:$true] %s729_s30 }
  0x5a   : > { %854 = vmatpush1.msk.msra.mxu0 %vm386_vm0, %v219_v2  ;;  %896 = vmatpush1.msk.msra.mxu1 %vm386_vm0, %v219_v2  ;;  %s1029_s12 = scalar_lea.vmem %s1441_s30, 8192  ;;  %p1507_p0 = scmp.ne.s32.totalorder %s1499_s22, 0 }
  0x5b   : > { %p1030_p8 = scmp.ne.s32.totalorder %s1441_s30, %s1029_s12  ;;  %s1120_s25 = smov [#allocation7]  }
  0x5c   : > { %s1033_s26 = sshll.u32 %s1120_s25, 4  ;;  %s1034_s26 = int_to_ptr.vmem [resolvable:$false] %s1033_s26 }
  0x5d   : > { %p1031_p7 = pnand %p1030_p8, %p1507_p0  ;;  %s1035_s3 = scalar_lea.vmem %s1034_s26, 16384 }
  0x5e   : > { %p1036_p10 = scmp.lt.s32.totalorder %s1441_s30, %s1034_s26  ;;  %p1037_p12 = scmp.lt.s32.totalorder %s1035_s3, %s1029_s12 }
  0x5f   : > { %p1032_p4 = pneg %p1031_p7 }
  0x60   : > { %p1038_p1 = por %p1037_p12, %p1036_p10 }
  0x62   : > { %p1039_p2 = pnand %p1038_p1, %p1032_p4 }
  0x95   : > { %255 = vxpose.xlu0.b32.start.end [1/1] (short) %v221_v4, 128 }
  0xd8   : > { %v239_v5 = vpop.trf.xlu0 }
  0xd9   : > { %855 = vmatmul.mubr.msk.f32.vlgmr.msra.gmra.mrb[0].mxu0 %vm289_vm1, %v239_v5 }
  0xda   : > { %461 = vmatprep.mubr.f32.mxu0 %v1119_v0 }
  0xdc   : > { %v240_v6 = vpop.trf.xlu0 }
  0xdd   : > { %856 = vmatmul.mubr.msk.f32.gmra.mrb[2].mxu0 %vm289_vm1, %v240_v6 }
  0xde   : > { %467 = vmatprep.mubr.f32.mxu0 %v1119_v0 }
  0xe0   : > { %v241_v7 = vpop.trf.xlu0 }
  0xe1   : > { %857 = vmatmul.mubr.msk.f32.gmra.mrb[4].mxu0 %vm289_vm1, %v241_v7 }
  0xe2   : > { %473 = vmatprep.mubr.f32.mxu0 %v1119_v0 }
  0xe4   : > { %v242_v8 = vpop.trf.xlu0 }
  0xe5   : > { %858 = vmatmul.mubr.msk.f32.gmra.mrb[6].mxu0 %vm289_vm1, %v242_v8 }
  0xe6   : > { %479 = vmatprep.mubr.f32.mxu0 %v1119_v0 }
  0xe8   : > { %v243_v9 = vpop.trf.xlu0 }
  0xe9   : > { %859 = vmatmul.mubr.msk.f32.gmra.mrb[8].mxu0 %vm289_vm1, %v243_v9 }
  0xea   : > { %485 = vmatprep.mubr.f32.mxu0 %v1119_v0 }
  0xec   : > { %v244_v10 = vpop.trf.xlu0 }
  0xed   : > { %860 = vmatmul.mubr.msk.f32.gmra.mrb[10].mxu0 %vm289_vm1, %v244_v10 }
  0xee   : > { %491 = vmatprep.mubr.f32.mxu0 %v1119_v0 }
  0xf0   : > { %v245_v11 = vpop.trf.xlu0 }
  0xf1   : > { %861 = vmatmul.mubr.msk.f32.gmra.mrb[12].mxu0 %vm289_vm1, %v245_v11 }
  0xf2   : > { %497 = vmatprep.mubr.f32.mxu0 %v1119_v0 }
  0xf4   : > { %v246_v12 = vpop.trf.xlu0 }
  0xf5   : > { %862 = vmatmul.mubr.msk.f32.gmra.mrb[14].mxu0 %vm289_vm1, %v246_v12 }
  0xf6   : > { %503 = vmatprep.mubr.f32.mxu0 %v1119_v0 }
  0xf8   : > { %v247_v13 = vpop.trf.xlu0 }
  0xf9   : > { %863 = vmatmul.mubr.msk.f32.gmra.mrb[16].mxu0 %vm289_vm1, %v247_v13 }
  0xfa   : > { %509 = vmatprep.mubr.f32.mxu0 %v1119_v0 }
  0xfc   : > { %v248_v14 = vpop.trf.xlu0 }
  0xfd   : > { %864 = vmatmul.mubr.msk.f32.gmra.mrb[18].mxu0 %vm289_vm1, %v248_v14 }
  0xfe   : > { %515 = vmatprep.mubr.f32.mxu0 %v1119_v0 }
 0x100   : > { %v249_v15 = vpop.trf.xlu0 }
 0x101   : > { %865 = vmatmul.mubr.msk.f32.gmra.mrb[20].mxu0 %vm289_vm1, %v249_v15 }
 0x102   : > { %521 = vmatprep.mubr.f32.mxu0 %v1119_v0 }
 0x104   : > { %v250_v16 = vpop.trf.xlu0 }
 0x105   : > { %866 = vmatmul.mubr.msk.f32.gmra.mrb[22].mxu0 %vm289_vm1, %v250_v16 }
 0x106   : > { %527 = vmatprep.mubr.f32.mxu0 %v1119_v0 }
 0x108   : > { %v251_v17 = vpop.trf.xlu0 }
 0x109   : > { %867 = vmatmul.mubr.msk.f32.gmra.mrb[24].mxu0 %vm289_vm1, %v251_v17 }
 0x10a   : > { %533 = vmatprep.mubr.f32.mxu0 %v1119_v0 }
 0x10c   : > { %v252_v18 = vpop.trf.xlu0 }
 0x10d   : > { %868 = vmatmul.mubr.msk.f32.gmra.mrb[26].mxu0 %vm289_vm1, %v252_v18 }
 0x10e   : > { %539 = vmatprep.mubr.f32.mxu0 %v1119_v0 }
 0x110   : > { %v253_v19 = vpop.trf.xlu0 }
 0x111   : > { %869 = vmatmul.mubr.msk.f32.gmra.mrb[28].mxu0 %vm289_vm1, %v253_v19 }
 0x112   : > { %545 = vmatprep.mubr.f32.mxu0 %v1119_v0 }
 0x114   : > { %v254_v20 = vpop.trf.xlu0 }
 0x115   : > { %870 = vmatmul.mubr.msk.f32.gmra.mrb[30].mxu0 %vm289_vm1, %v254_v20 }
 0x118   : > { %v271_v21 = vpop.trf.xlu0 }
 0x119   : > { %871 = vmatmul.mubr.msk.f32.vlgmr.msra.gmra.mrb[0].mxu1 %vm289_vm1, %v271_v21 }
 0x11a   : > { %557 = vmatprep.mubr.f32.mxu1 %v1119_v0 }
 0x11c   : > { %v272_v22 = vpop.trf.xlu0 }
 0x11d   : > { %872 = vmatmul.mubr.msk.f32.gmra.mrb[2].mxu1 %vm289_vm1, %v272_v22 }
 0x11e   : > { %563 = vmatprep.mubr.f32.mxu1 %v1119_v0 }
 0x120   : > { %v273_v23 = vpop.trf.xlu0 }
 0x121   : > { %873 = vmatmul.mubr.msk.f32.gmra.mrb[4].mxu1 %vm289_vm1, %v273_v23 }
 0x122   : > { %569 = vmatprep.mubr.f32.mxu1 %v1119_v0 }
 0x124   : > { %v274_v24 = vpop.trf.xlu0 }
 0x125   : > { %874 = vmatmul.mubr.msk.f32.gmra.mrb[6].mxu1 %vm289_vm1, %v274_v24 }
 0x126   : > { %575 = vmatprep.mubr.f32.mxu1 %v1119_v0 }
 0x128   : > { %v275_v25 = vpop.trf.xlu0 }
 0x129   : > { %875 = vmatmul.mubr.msk.f32.gmra.mrb[8].mxu1 %vm289_vm1, %v275_v25 }
 0x12a   : > { %581 = vmatprep.mubr.f32.mxu1 %v1119_v0 }
 0x12c   : > { %v276_v26 = vpop.trf.xlu0 }
 0x12d   : > { %876 = vmatmul.mubr.msk.f32.gmra.mrb[10].mxu1 %vm289_vm1, %v276_v26 }
 0x12e   : > { %587 = vmatprep.mubr.f32.mxu1 %v1119_v0 }
 0x130   : > { %v277_v27 = vpop.trf.xlu0 }
 0x131   : > { %877 = vmatmul.mubr.msk.f32.gmra.mrb[12].mxu1 %vm289_vm1, %v277_v27 }
 0x132   : > { %593 = vmatprep.mubr.f32.mxu1 %v1119_v0 }
 0x134   : > { %v278_v28 = vpop.trf.xlu0 }
 0x135   : > { %878 = vmatmul.mubr.msk.f32.gmra.mrb[14].mxu1 %vm289_vm1, %v278_v28 }
 0x136   : > { %599 = vmatprep.mubr.f32.mxu1 %v1119_v0 }
 0x138   : > { %v279_v29 = vpop.trf.xlu0 }
 0x139   : > { %879 = vmatmul.mubr.msk.f32.gmra.mrb[16].mxu1 %vm289_vm1, %v279_v29 }
 0x13a   : > { %605 = vmatprep.mubr.f32.mxu1 %v1119_v0 }
 0x13c   : > { %v280_v30 = vpop.trf.xlu0 }
 0x13d   : > { %880 = vmatmul.mubr.msk.f32.gmra.mrb[18].mxu1 %vm289_vm1, %v280_v30 }
 0x13e   : > { %611 = vmatprep.mubr.f32.mxu1 %v1119_v0 }
 0x140   : > { %v281_v31 = vpop.trf.xlu0 }
 0x141   : > { %881 = vmatmul.mubr.msk.f32.gmra.mrb[20].mxu1 %vm289_vm1, %v281_v31 }
 0x142   : > { %617 = vmatprep.mubr.f32.mxu1 %v1119_v0 }
 0x144   : > { %v282_v32 = vpop.trf.xlu0 }
 0x145   : > { %882 = vmatmul.mubr.msk.f32.gmra.mrb[22].mxu1 %vm289_vm1, %v282_v32 }
 0x146   : > { %623 = vmatprep.mubr.f32.mxu1 %v1119_v0 }
 0x148   : > { %v283_v33 = vpop.trf.xlu0 }
 0x149   : > { %883 = vmatmul.mubr.msk.f32.gmra.mrb[24].mxu1 %vm289_vm1, %v283_v33 }
 0x14a   : > { %629 = vmatprep.mubr.f32.mxu1 %v1119_v0 }
 0x14c   : > { %v284_v34 = vpop.trf.xlu0 }
 0x14d   : > { %884 = vmatmul.mubr.msk.f32.gmra.mrb[26].mxu1 %vm289_vm1, %v284_v34 }
 0x14e   : > { %635 = vmatprep.mubr.f32.mxu1 %v1119_v0 }
 0x150   : > { %v285_v35 = vpop.trf.xlu0 }
 0x151   : > { %885 = vmatmul.mubr.msk.f32.gmra.mrb[28].mxu1 %vm289_vm1, %v285_v35 }
 0x152   : > { %641 = vmatprep.mubr.f32.mxu1 %v1119_v0 }
 0x154   : > { %v286_v36 = vpop.trf.xlu0 }
 0x155   : > { %886 = vmatmul.mubr.msk.f32.gmra.mrb[30].mxu1 %vm289_vm1, %v286_v36 }
 0x1ac   : > { %v457_v37 = vpop.f32.mrb[0].mxu0 }
 0x1ad   : > { %648 = vst [vmem:[%s1370_s7] sm:$0xff] %v457_v37  ;;  %v459_v38 = vpop.f32.mrb[1].mxu0 }
 0x1ae   : > { %649 = vst [vmem:[%s1370_s7 + $0x8] sm:$0xff] %v459_v38 }
 0x1b0   : > { %v463_v39 = vpop.f32.mrb[2].mxu0 }
 0x1b1   : > { %650 = vst [vmem:[%s1370_s7 + $0x10] sm:$0xff] %v463_v39  ;;  %v465_v40 = vpop.f32.mrb[3].mxu0 }
 0x1b2   : > { %651 = vst [vmem:[%s1370_s7 + $0x18] sm:$0xff] %v465_v40 }
 0x1b4   : > { %v469_v41 = vpop.f32.mrb[4].mxu0 }
 0x1b5   : > { %652 = vst [vmem:[%s1370_s7 + $0x20] sm:$0xff] %v469_v41  ;;  %v471_v42 = vpop.f32.mrb[5].mxu0 }
 0x1b6   : > { %653 = vst [vmem:[%s1370_s7 + $0x28] sm:$0xff] %v471_v42 }
 0x1b8   : > { %v475_v43 = vpop.f32.mrb[6].mxu0 }
 0x1b9   : > { %654 = vst [vmem:[%s1370_s7 + $0x30] sm:$0xff] %v475_v43  ;;  %v477_v44 = vpop.f32.mrb[7].mxu0 }
 0x1ba   : > { %655 = vst [vmem:[%s1370_s7 + $0x38] sm:$0xff] %v477_v44 }
 0x1bc   : > { %v481_v45 = vpop.f32.mrb[8].mxu0 }
 0x1bd   : > { %656 = vst [vmem:[%s1370_s7 + $0x40] sm:$0xff] %v481_v45  ;;  %v483_v46 = vpop.f32.mrb[9].mxu0 }
 0x1be   : > { %657 = vst [vmem:[%s1370_s7 + $0x48] sm:$0xff] %v483_v46 }
 0x1c0   : > { %v487_v47 = vpop.f32.mrb[10].mxu0 }
 0x1c1   : > { %658 = vst [vmem:[%s1370_s7 + $0x50] sm:$0xff] %v487_v47  ;;  %v489_v48 = vpop.f32.mrb[11].mxu0 }
 0x1c2   : > { %659 = vst [vmem:[%s1370_s7 + $0x58] sm:$0xff] %v489_v48 }
 0x1c4   : > { %v493_v49 = vpop.f32.mrb[12].mxu0 }
 0x1c5   : > { %660 = vst [vmem:[%s1370_s7 + $0x60] sm:$0xff] %v493_v49  ;;  %v495_v50 = vpop.f32.mrb[13].mxu0 }
 0x1c6   : > { %661 = vst [vmem:[%s1370_s7 + $0x68] sm:$0xff] %v495_v50 }
 0x1c8   : > { %v499_v51 = vpop.f32.mrb[14].mxu0 }
 0x1c9   : > { %662 = vst [vmem:[%s1370_s7 + $0x70] sm:$0xff] %v499_v51  ;;  %v501_v52 = vpop.f32.mrb[15].mxu0 }
 0x1ca   : > { %663 = vst [vmem:[%s1370_s7 + $0x78] sm:$0xff] %v501_v52 }
 0x1cc   : > { %v505_v53 = vpop.f32.mrb[16].mxu0 }
 0x1cd   : > { %664 = vst [vmem:[%s1370_s7 + $0x80] sm:$0xff] %v505_v53  ;;  %v507_v54 = vpop.f32.mrb[17].mxu0 }
 0x1ce   : > { %665 = vst [vmem:[%s1370_s7 + $0x88] sm:$0xff] %v507_v54 }
 0x1d0   : > { %v511_v55 = vpop.f32.mrb[18].mxu0 }
 0x1d1   : > { %666 = vst [vmem:[%s1370_s7 + $0x90] sm:$0xff] %v511_v55  ;;  %v513_v56 = vpop.f32.mrb[19].mxu0 }
 0x1d2   : > { %667 = vst [vmem:[%s1370_s7 + $0x98] sm:$0xff] %v513_v56 }
 0x1d4   : > { %v517_v57 = vpop.f32.mrb[20].mxu0 }
 0x1d5   : > { %668 = vst [vmem:[%s1370_s7 + $0xa0] sm:$0xff] %v517_v57  ;;  %v519_v58 = vpop.f32.mrb[21].mxu0 }
 0x1d6   : > { %669 = vst [vmem:[%s1370_s7 + $0xa8] sm:$0xff] %v519_v58 }
 0x1d8   : > { %v523_v59 = vpop.f32.mrb[22].mxu0 }
 0x1d9   : > { %670 = vst [vmem:[%s1370_s7 + $0xb0] sm:$0xff] %v523_v59  ;;  %v525_v60 = vpop.f32.mrb[23].mxu0 }
 0x1da   : > { %671 = vst [vmem:[%s1370_s7 + $0xb8] sm:$0xff] %v525_v60 }
 0x1dc   : > { %v529_v61 = vpop.f32.mrb[24].mxu0 }
 0x1dd   : > { %672 = vst [vmem:[%s1370_s7 + $0xc0] sm:$0xff] %v529_v61  ;;  %v531_v62 = vpop.f32.mrb[25].mxu0 }
 0x1de   : > { %673 = vst [vmem:[%s1370_s7 + $0xc8] sm:$0xff] %v531_v62 }
 0x1e0   : > { %v535_v63 = vpop.f32.mrb[26].mxu0 }
 0x1e1   : > { %674 = vst [vmem:[%s1370_s7 + $0xd0] sm:$0xff] %v535_v63  ;;  %v537_v0 = vpop.f32.mrb[27].mxu0 }
 0x1e2   : > { %675 = vst [vmem:[%s1370_s7 + $0xd8] sm:$0xff] %v537_v0 }
 0x1e4   : > { %v541_v1 = vpop.f32.mrb[28].mxu0 }
 0x1e5   : > { %676 = vst [vmem:[%s1370_s7 + $0xe0] sm:$0xff] %v541_v1  ;;  %v543_v2 = vpop.f32.mrb[29].mxu0 }
 0x1e6   : > { %677 = vst [vmem:[%s1370_s7 + $0xe8] sm:$0xff] %v543_v2 }
 0x1e8   : > { %v547_v3 = vpop.f32.mrb[30].mxu0 }
 0x1e9   : > { %678 = vst [vmem:[%s1370_s7 + $0xf0] sm:$0xff] %v547_v3  ;;  %v549_v4 = vpop.f32.mrb[31].mxu0 }
 0x1ea   : > { %679 = vst [vmem:[%s1370_s7 + $0xf8] sm:$0xff] %v549_v4 }
 0x1ec   : > { %v553_v5 = vpop.f32.mrb[0].mxu1 }
 0x1ed   : > { %680 = vst [vmem:[%s1370_s7 + $0x100] sm:$0xff] %v553_v5  ;;  %v555_v6 = vpop.f32.mrb[1].mxu1 }
 0x1ee   : > { %681 = vst [vmem:[%s1370_s7 + $0x108] sm:$0xff] %v555_v6 }
 0x1f0   : > { %v559_v7 = vpop.f32.mrb[2].mxu1 }
 0x1f1   : > { %682 = vst [vmem:[%s1370_s7 + $0x110] sm:$0xff] %v559_v7  ;;  %v561_v8 = vpop.f32.mrb[3].mxu1 }
 0x1f2   : > { %683 = vst [vmem:[%s1370_s7 + $0x118] sm:$0xff] %v561_v8 }
 0x1f4   : > { %v565_v9 = vpop.f32.mrb[4].mxu1 }
 0x1f5   : > { %684 = vst [vmem:[%s1370_s7 + $0x120] sm:$0xff] %v565_v9  ;;  %v567_v10 = vpop.f32.mrb[5].mxu1 }
 0x1f6   : > { %685 = vst [vmem:[%s1370_s7 + $0x128] sm:$0xff] %v567_v10 }
 0x1f8   : > { %v571_v11 = vpop.f32.mrb[6].mxu1 }
 0x1f9   : > { %686 = vst [vmem:[%s1370_s7 + $0x130] sm:$0xff] %v571_v11  ;;  %v573_v12 = vpop.f32.mrb[7].mxu1 }
 0x1fa   : > { %687 = vst [vmem:[%s1370_s7 + $0x138] sm:$0xff] %v573_v12 }
 0x1fc   : > { %v577_v13 = vpop.f32.mrb[8].mxu1 }
 0x1fd   : > { %688 = vst [vmem:[%s1370_s7 + $0x140] sm:$0xff] %v577_v13  ;;  %v579_v14 = vpop.f32.mrb[9].mxu1 }
 0x1fe   : > { %689 = vst [vmem:[%s1370_s7 + $0x148] sm:$0xff] %v579_v14 }
 0x200   : > { %v583_v15 = vpop.f32.mrb[10].mxu1 }
 0x201   : > { %690 = vst [vmem:[%s1370_s7 + $0x150] sm:$0xff] %v583_v15  ;;  %v585_v16 = vpop.f32.mrb[11].mxu1 }
 0x202   : > { %691 = vst [vmem:[%s1370_s7 + $0x158] sm:$0xff] %v585_v16 }
 0x204   : > { %v589_v17 = vpop.f32.mrb[12].mxu1 }
 0x205   : > { %692 = vst [vmem:[%s1370_s7 + $0x160] sm:$0xff] %v589_v17  ;;  %v591_v18 = vpop.f32.mrb[13].mxu1 }
 0x206   : > { %693 = vst [vmem:[%s1370_s7 + $0x168] sm:$0xff] %v591_v18 }
 0x208   : > { %v595_v19 = vpop.f32.mrb[14].mxu1 }
 0x209   : > { %694 = vst [vmem:[%s1370_s7 + $0x170] sm:$0xff] %v595_v19  ;;  %v597_v20 = vpop.f32.mrb[15].mxu1 }
 0x20a   : > { %695 = vst [vmem:[%s1370_s7 + $0x178] sm:$0xff] %v597_v20 }
 0x20c   : > { %v601_v21 = vpop.f32.mrb[16].mxu1 }
 0x20d   : > { %696 = vst [vmem:[%s1370_s7 + $0x180] sm:$0xff] %v601_v21  ;;  %v603_v22 = vpop.f32.mrb[17].mxu1 }
 0x20e   : > { %697 = vst [vmem:[%s1370_s7 + $0x188] sm:$0xff] %v603_v22 }
 0x210   : > { %v607_v23 = vpop.f32.mrb[18].mxu1 }
 0x211   : > { %698 = vst [vmem:[%s1370_s7 + $0x190] sm:$0xff] %v607_v23  ;;  %v609_v24 = vpop.f32.mrb[19].mxu1 }
 0x212   : > { %699 = vst [vmem:[%s1370_s7 + $0x198] sm:$0xff] %v609_v24 }
 0x214   : > { %v613_v25 = vpop.f32.mrb[20].mxu1 }
 0x215   : > { %700 = vst [vmem:[%s1370_s7 + $0x1a0] sm:$0xff] %v613_v25  ;;  %v615_v26 = vpop.f32.mrb[21].mxu1 }
 0x216   : > { %701 = vst [vmem:[%s1370_s7 + $0x1a8] sm:$0xff] %v615_v26 }
 0x218   : > { %v619_v27 = vpop.f32.mrb[22].mxu1 }
 0x219   : > { %702 = vst [vmem:[%s1370_s7 + $0x1b0] sm:$0xff] %v619_v27  ;;  %v621_v28 = vpop.f32.mrb[23].mxu1 }
 0x21a   : > { %703 = vst [vmem:[%s1370_s7 + $0x1b8] sm:$0xff] %v621_v28 }
 0x21c   : > { %v625_v29 = vpop.f32.mrb[24].mxu1 }
 0x21d   : > { %704 = vst [vmem:[%s1370_s7 + $0x1c0] sm:$0xff] %v625_v29  ;;  %v627_v30 = vpop.f32.mrb[25].mxu1 }
 0x21e   : > { %705 = vst [vmem:[%s1370_s7 + $0x1c8] sm:$0xff] %v627_v30 }
 0x220   : > { %v631_v31 = vpop.f32.mrb[26].mxu1 }
 0x221   : > { %706 = vst [vmem:[%s1370_s7 + $0x1d0] sm:$0xff] %v631_v31  ;;  %v633_v32 = vpop.f32.mrb[27].mxu1 }
 0x222   : > { %707 = vst [vmem:[%s1370_s7 + $0x1d8] sm:$0xff] %v633_v32 }
 0x224   : > { %v637_v33 = vpop.f32.mrb[28].mxu1 }
 0x225   : > { %708 = vst [vmem:[%s1370_s7 + $0x1e0] sm:$0xff] %v637_v33  ;;  %v639_v34 = vpop.f32.mrb[29].mxu1 }
 0x226   : > { %709 = vst [vmem:[%s1370_s7 + $0x1e8] sm:$0xff] %v639_v34 }
 0x228   : > { %v643_v35 = vpop.f32.mrb[30].mxu1 }
 0x229   : > { %710 = vst [vmem:[%s1370_s7 + $0x1f0] sm:$0xff] %v643_v35  ;;  %v645_v36 = vpop.f32.mrb[31].mxu1 }
 0x22a   : > { %711 = vst [vmem:[%s1370_s7 + $0x1f8] sm:$0xff] %v645_v36 }
 0x22b   : > { %1042 = shalt.err (!%p1039_p2)
}
 0x22c   : > { %s1043_s8 = scalar_lea.hbm %s1439_s28, 8192  ;;  %s1047_s6 = scalar_lea.hbm %s1494_s2, 16384 }
 0x22d   : > { %p1044_p9 = scmp.ne.s32.totalorder %s1439_s28, %s1043_s8  ;;  %p1048_p6 = scmp.lt.u32.totalorder %s1439_s28, %s1494_s2 }
 0x22e   : > { %p1049_p13 = scmp.lt.u32.totalorder %s1047_s6, %s1043_s8  ;;  %p1051_p8 = scmp.lt.u32.totalorder %s1043_s8, %s1439_s28 }
 0x22f   : > { %p1045_p11 = pnand %p1044_p9, %p1507_p0 }
 0x230   : > { %p1050_p5 = por %p1049_p13, %p1048_p6 }
 0x231   : > { %p1046_p3 = pneg %p1045_p11 }
 0x232   : > { %p1052_p7 = por %p1051_p8, %p1050_p5 }
 0x234   : > { %p1053_p4 = pnand %p1052_p7, %p1046_p3 }
 0x236   : > { %1056 = shalt.err (!%p1053_p4)
}
 0x237   : > { %s1121_s21 = smov 256   ;;  %s1122_s7 = smov 16  }
 0x238   : > { %901 = dma.vmem_to_hbm [thread:$0]  (%p1507_p0), %s1441_s30, 8192, %s1439_s28, %s713_s29, %s1121_s21, %s1121_s21, %s1122_s7  }
 0x239 PF: > { %s744_s19 = sand.u32 1, %s1095_s9   ;;  %p1508_p10 = scmp.ne.s32.totalorder %s1500_s24, 0 }
 0x23a   : > { %p1509_p12 = scmp.ge.s32.totalorder %s1115_s14, 2  ;;  %s745_s20 = scalar_lea.sflag [#allocation4], %s744_s19 }
 0x23c   : > { %p911_p1 = pnand %p1509_p12, %p1508_p10 }
 0x23e   : > { %1090 = dma.done.wait (!%p911_p1), %s745_s20, 8192  }
 0x23f   : > { %1092 = vsyncadd (!%p911_p1), %s745_s20, 4294959104  ;;  %s21_s14 = sadd.s32 1, %s1115_s14   ;;  %s1510_s9 = smov %s1099_s10 }
 0x240   : > { %p18_p2 = scmp.ge.s32.totalorder %s21_s14, 4   ;;  %s1511_s10 = smov %s1103_s11 }
 0x241   : > { %s1512_s11 = smov %s1194_s23  ;;  %s1513_s12 = smov %s1111_s13 }
 0x242   : > { %s1514_s13 = smov %s1516_s17  ;;  %20 = sbr.rel (!%p18_p2) target bundleno = 8 (0x8), region = 86 }
 0x249   :  { %750 = vsyncpa [#allocation3], 1 }
 0x24a   :  { %752 = vsyncpa [#allocation3 + $0x1], 1 }
 0x24b   :  { %753 = vsyncpa [#allocation6], 1 }
 0x24c   :  { %755 = vsyncpa [#allocation6 + $0x1], 1 }
 0x24d   :  { %756 = vsyncpa [#allocation4], 1 }
 0x24e   :  { %758 = vsyncpa [#allocation4 + $0x1], 1 }

</bundles_post_ra>
